<compile_context>
chip_gen: v5e
topology: v5e:2x2
jax: 0.10.0
libtpu: 0.0.40
codegen_flags: <defaults>
</compile_context>

<pallas_src>
import functools

import jax
import jax.numpy as jnp
from jax.experimental import pallas as pl
from jax.experimental.pallas import tpu as pltpu


def _bprmf_kernel(ids_ref,            # (2, TB) int32: row 0 = user ids, row 1 = item ids
                  u_tab_ref,          # (D, NU) f32 table, fully resident in VMEM
                  i_tab_ref,          # (D, NI) f32 table, fully resident in VMEM
                  o_ref):             # (1, TB) f32 scores (lane-dense per-step slice)
    ids = ids_ref[...]                # (2, TB)
    u_ids = ids[0:1, :]               # (1, TB)
    i_ids = ids[1:2, :]               # (1, TB)
    u_tab = u_tab_ref[...]            # (D, NU)
    i_tab = i_tab_ref[...]            # (D, NI)

    tb = o_ref.shape[1]
    nu = u_tab.shape[1]
    ni = i_tab.shape[1]

    # Exact 0/1 one-hot row gather as MXU selection matmuls.
    sel_u = (jax.lax.broadcasted_iota(jnp.int32, (nu, tb), 0) == u_ids).astype(u_tab.dtype)
    sel_i = (jax.lax.broadcasted_iota(jnp.int32, (ni, tb), 0) == i_ids).astype(i_tab.dtype)

    u_emb = jnp.dot(u_tab, sel_u, preferred_element_type=jnp.float32)   # (D, TB)
    i_emb = jnp.dot(i_tab, sel_i, preferred_element_type=jnp.float32)   # (D, TB)

    # (user_emb * item_emb).sum(dim=1): sublane reduce over D -> lane-dense (1, TB)
    o_ref[...] = jnp.sum(u_emb * i_emb, axis=0, keepdims=True)


def prepare_bprmf_tables(user_table, item_table):
    """One-time prep: transpose to (D, N) f32 so the jitted forward never
    re-reads/re-writes the tables in HBM before the kernel's own DMA."""
    return (jnp.asarray(user_table, jnp.float32).T,
            jnp.asarray(item_table, jnp.float32).T)


@functools.partial(jax.jit, static_argnames=("tb",))
def bprmf_forward(user_table_t, item_table_t, user_ids, item_ids, *, tb=256):
    """score[b] = sum_d user_table[user_ids[b], d] * item_table[item_ids[b], d]

    user_table_t / item_table_t are pre-transposed (D, N) f32 (see
    prepare_bprmf_tables).
    """
    B = user_ids.shape[0]
    D, num_users = user_table_t.shape
    _, num_items = item_table_t.shape

    # ---- batch tiling (all static; derived from shapes) ---------------------
    b128 = pl.cdiv(B, 128) * 128
    tb_eff = max(128, min(tb, b128))
    # Keep >= 2 grid steps when the batch allows it (both TCs on v7x get work).
    while tb_eff > 128 and b128 // tb_eff < 2:
        tb_eff //= 2
    tb_eff = max(128, (tb_eff // 128) * 128)       # keep a multiple of 128 lanes
    b_pad = pl.cdiv(B, tb_eff) * tb_eff
    grid = (b_pad // tb_eff,)

    # Packed + padded ids: (2, b_pad). jnp.pad avoids the per-call scatter.
    ids = jnp.stack([user_ids.astype(jnp.int32), item_ids.astype(jnp.int32)])
    ids = jnp.pad(ids, ((0, 0), (0, b_pad - B)))

    # ---- VMEM budget / cost hint --------------------------------------------
    tables_bytes = 4 * D * (num_users + num_items)          # single-buffered residents
    ids_bytes = 4 * 2 * b_pad
    out_bytes = 4 * b_pad
    # selectors (N, TB) + (D, TB) intermediates may spill to VMEM; leave room.
    work_bytes = 4 * tb_eff * (num_users + num_items) + 2 * 4 * D * tb_eff
    vmem_limit = int(min(max(tables_bytes + work_bytes + (8 << 20), 32 << 20), 64 << 20))

    cost = pl.CostEstimate(
        flops=2 * (num_users + num_items) * D * b_pad,
        transcendentals=0,
        bytes_accessed=tables_bytes + ids_bytes + out_bytes,
    )

    out = pl.pallas_call(
        _bprmf_kernel,
        out_shape=jax.ShapeDtypeStruct((1, b_pad), jnp.float32),
        grid_spec=pltpu.PrefetchScalarGridSpec(
            num_scalar_prefetch=0,
            grid=grid,
            in_specs=[
                pl.BlockSpec((2, tb_eff), lambda b: (0, b)),         # packed id slice
                pl.BlockSpec(memory_space=pltpu.MemorySpace.VMEM),   # user table, resident
                pl.BlockSpec(memory_space=pltpu.MemorySpace.VMEM),   # item table, resident
            ],
            out_specs=pl.BlockSpec((1, tb_eff), lambda b: (0, b)),   # lane-dense slice
        ),
        compiler_params=pltpu.CompilerParams(
            dimension_semantics=("parallel",),
            vmem_limit_bytes=vmem_limit,
        ),
        cost_estimate=cost,
    )(ids, user_table_t, item_table_t)

    return out[0, :B]


def init_bprmf_params(key, num_users, num_items, embedding_dim=64):
    """Deterministic parameter init matching nn.init.normal_(std=0.01)."""
    ku, ki = jax.random.split(key)
    user_table = 0.01 * jax.random.normal(ku, (num_users, embedding_dim),
                                          dtype=jnp.float32)
    item_table = 0.01 * jax.random.normal(ki, (num_items, embedding_dim),
                                          dtype=jnp.float32)
    return user_table, item_table


if __name__ == "__main__":
    num_users, num_items, embedding_dim = 32, 48, 64
    batch = 8

    key = jax.random.PRNGKey(0)
    kp, ku, ki = jax.random.split(key, 3)

    user_table, item_table = init_bprmf_params(kp, num_users, num_items,
                                               embedding_dim)
    user_ids = jax.random.randint(ku, (batch,), 0, num_users, dtype=jnp.int32)
    item_ids = jax.random.randint(ki, (batch,), 0, num_items, dtype=jnp.int32)

    # One-time table prep (outside the per-call jitted forward).
    user_table_t, item_table_t = prepare_bprmf_tables(user_table, item_table)

    scores = bprmf_forward(user_table_t, item_table_t, user_ids, item_ids)
    scores = jax.block_until_ready(scores)

    # reference check (plain JAX)
    ref = jnp.sum(user_table[user_ids] * item_table[item_ids], axis=1)
    assert scores.shape == (batch,)
    assert jnp.allclose(scores, ref, atol=2e-5, rtol=2e-3), (scores, ref)

    print("KERNEL_OK")
</pallas_src>

<mosaic_0001>
module attributes {stable_mosaic.version = 11 : i64} {
  func.func @_bprmf_kernel(%arg0: i32, %arg1: memref<2x128xi32, #tpu.memory_space<vmem>>, %arg2: memref<64x32xf32, #tpu.memory_space<vmem>>, %arg3: memref<64x48xf32, #tpu.memory_space<vmem>>, %arg4: memref<1x128xf32, #tpu.memory_space<vmem>>) attributes {dimension_semantics = [#tpu.dimension_semantics<parallel>], iteration_bounds = array<i64: 1>, scalar_prefetch = 0 : i64, scratch_operands = 0 : i64, tpu.core_type = #tpu.core_type<tc>, window_params = [{transform_indices = @transform_0, window_bounds = array<i64: 2, 128>}, {pipeline_mode = #tpu.pipeline_mode<synchronous>, transform_indices = @transform_1, window_bounds = array<i64: 64, 32>}, {pipeline_mode = #tpu.pipeline_mode<synchronous>, transform_indices = @transform_2, window_bounds = array<i64: 64, 48>}, {transform_indices = @transform_3, window_bounds = array<i64: 1, 128>}]} {
    %c0 = arith.constant 0 : index
    %c0_0 = arith.constant 0 : index
    %0 = vector.load %arg1[%c0, %c0_0] : memref<2x128xi32, #tpu.memory_space<vmem>>, vector<2x128xi32>
    %1 = vector.extract_strided_slice %0 {offsets = [0, 0], sizes = [1, 128], strides = [1, 1]} : vector<2x128xi32> to vector<1x128xi32>
    %2 = vector.extract_strided_slice %0 {offsets = [1, 0], sizes = [1, 128], strides = [1, 1]} : vector<2x128xi32> to vector<1x128xi32>
    %c0_1 = arith.constant 0 : index
    %c0_2 = arith.constant 0 : index
    %3 = vector.load %arg2[%c0_1, %c0_2] : memref<64x32xf32, #tpu.memory_space<vmem>>, vector<64x32xf32>
    %c0_3 = arith.constant 0 : index
    %c0_4 = arith.constant 0 : index
    %4 = vector.load %arg3[%c0_3, %c0_4] : memref<64x48xf32, #tpu.memory_space<vmem>>, vector<64x48xf32>
    %5 = tpu.iota {dimensions = array<i32: 0>} : vector<32x128xi32>
    %6 = vector.broadcast %1 : vector<1x128xi32> to vector<32x128xi32>
    %7 = arith.cmpi eq, %5, %6 : vector<32x128xi32>
    %8 = arith.extui %7 : vector<32x128xi1> to vector<32x128xi32>
    %9 = arith.sitofp %8 : vector<32x128xi32> to vector<32x128xf32>
    %10 = tpu.iota {dimensions = array<i32: 0>} : vector<48x128xi32>
    %11 = vector.broadcast %2 : vector<1x128xi32> to vector<48x128xi32>
    %12 = arith.cmpi eq, %10, %11 : vector<48x128xi32>
    %13 = arith.extui %12 : vector<48x128xi1> to vector<48x128xi32>
    %14 = arith.sitofp %13 : vector<48x128xi32> to vector<48x128xf32>
    %cst = arith.constant dense<0.000000e+00> : vector<64x128xf32>
    %15 = tpu.matmul %3, %9, %cst {dimension_numbers = #tpu.dot_dimension_numbers<[1], [0], [0], [1], [0, 0, 1, 1], [], []>} : vector<64x32xf32>, vector<32x128xf32>, vector<64x128xf32> -> vector<64x128xf32>
    %cst_5 = arith.constant dense<0.000000e+00> : vector<64x128xf32>
    %16 = tpu.matmul %4, %14, %cst_5 {dimension_numbers = #tpu.dot_dimension_numbers<[1], [0], [0], [1], [0, 0, 1, 1], [], []>} : vector<64x48xf32>, vector<48x128xf32>, vector<64x128xf32> -> vector<64x128xf32>
    %17 = arith.mulf %15, %16 : vector<64x128xf32>
    %cst_6 = arith.constant dense<0.000000e+00> : vector<128xf32>
    %18 = vector.multi_reduction <add>, %17, %cst_6 [0] : vector<64x128xf32> to vector<128xf32>
    %19 = vector.shape_cast %18 : vector<128xf32> to vector<1x128xf32>
    %c0_7 = arith.constant 0 : index
    %c0_8 = arith.constant 0 : index
    %20 = vector.load %arg4[%c0_7, %c0_8] : memref<1x128xf32, #tpu.memory_space<vmem>>, vector<1x128xf32>
    tpu.vector_store %arg4[%c0_7, %c0_8], %19 {strides = array<i32>} : memref<1x128xf32, #tpu.memory_space<vmem>>, vector<1x128xf32>,
    return
  }
  func.func @transform_0(%arg0: i32) -> (i32, i32) {
    %c0_i32 = arith.constant 0 : i32
    %c0_i32_0 = arith.constant 0 : i32
    return %c0_i32, %arg0 : i32, i32
  }
  func.func @transform_1(%arg0: i32) -> (i32, i32) {
    %c0_i32 = arith.constant 0 : i32
    %c0_i32_0 = arith.constant 0 : i32
    %c0_i32_1 = arith.constant 0 : i32
    return %c0_i32, %c0_i32_0 : i32, i32
  }
  func.func @transform_2(%arg0: i32) -> (i32, i32) {
    %c0_i32 = arith.constant 0 : i32
    %c0_i32_0 = arith.constant 0 : i32
    %c0_i32_1 = arith.constant 0 : i32
    return %c0_i32, %c0_i32_0 : i32, i32
  }
  func.func @transform_3(%arg0: i32) -> (i32, i32) {
    %c0_i32 = arith.constant 0 : i32
    %c0_i32_0 = arith.constant 0 : i32
    return %c0_i32, %arg0 : i32, i32
  }
}

</mosaic_0001>

<bundles_post_ra>
// kernel: bprmf_forward.1
= control target key start
LH: loop header
LB: loop body
LE: loop exit
PB: predicated region body
PF: predicated region fallthrough
CT: control target
= control target key end

     0   :  { %v31_v0 = vlaneseq  ;;  %v275_v10 = vmov 1.0   ;;  %vm70_vm8 = vcmask 261120   ;;  %vm136_vm11 = vcmask 392192   ;;  %s370_s0 = inlined_call_operand.vmem [shape: s32[2,128], index: 0, kind: input, shape index: {}]   ;;  %s371_s1 = inlined_call_operand.vmem [shape: f32[64,32], index: 1, kind: input, shape index: {}]   ;;  %s372_s2 = inlined_call_operand.vmem [shape: f32[64,48], index: 2, kind: input, shape index: {}]   ;;  %s373_s3 = inlined_call_operand.vmem [shape: f32[1,128], index: 3, kind: output, shape index: {}]  }
   0x1   :  { %v14_v1 = vld [vmem:[%s370_s0] sm:$0x3]  ;;  %v20_v12 = vld [vmem:[%s371_s1 + $0x28] sm:$0xff]  ;;  %v21_v16 = vld [vmem:[%s371_s1 + $0x30] sm:$0xff] }
   0x2   :  { %v32_v2 = vshrl.u32 %v31_v0, 7  ;;  %v36_v3 = vperm.slane %v14_v1, 0  ;;  %v51_v4 = vperm.slane %v14_v1, 1  ;;  %v15_v11 = vld [vmem:[%s371_s1] sm:$0xff]  ;;  %v16_v15 = vld [vmem:[%s371_s1 + $0x8] sm:$0xff]  ;;  %v17_v19 = vld [vmem:[%s371_s1 + $0x10] sm:$0xff] }
   0x3   :  { %v23_v13 = vld [vmem:[%s372_s2] sm:$0xff]  ;;  %v24_v17 = vld [vmem:[%s372_s2 + $0x8] sm:$0xff]  ;;  %v22_v20 = vld [vmem:[%s371_s1 + $0x38] sm:$0xff] }
   0x4   :  { %v35_v5 = vadd.s32 24, %v32_v2  ;;  %v50_v6 = vadd.s32 40, %v32_v2  ;;  %v34_v7 = vadd.s32 16, %v32_v2  ;;  %v49_v8 = vadd.s32 32, %v32_v2  ;;  %v27_v14 = vld [vmem:[%s372_s2 + $0x20] sm:$0xff]  ;;  %v28_v18 = vld [vmem:[%s372_s2 + $0x28] sm:$0xff] }
   0x5   :  { %v33_v9 = vadd.s32 8, %v32_v2  ;;  %vm37_vm6 = vcmp.eq.s32.totalorder %v32_v2, %v36_v3  ;;  %vm52_vm10 = vcmp.eq.s32.totalorder %v32_v2, %v51_v4  ;;  %v25_v21 = vld [vmem:[%s372_s2 + $0x10] sm:$0xff]  ;;  %v18_v23 = vld [vmem:[%s371_s1 + $0x18] sm:$0xff]  ;;  %v19_v26 = vld [vmem:[%s371_s1 + $0x20] sm:$0xff] }
   0x6   :  { %vm40_vm0 = vcmp.eq.s32.totalorder %v35_v5, %v36_v3  ;;  %vm57_vm1 = vcmp.eq.s32.totalorder %v50_v6, %v51_v4  ;;  %vm39_vm2 = vcmp.eq.s32.totalorder %v34_v7, %v36_v3  ;;  %vm56_vm3 = vcmp.eq.s32.totalorder %v49_v8, %v51_v4  ;;  %v29_v22 = vld [vmem:[%s372_s2 + $0x30] sm:$0xff]  ;;  %v26_v24 = vld [vmem:[%s372_s2 + $0x18] sm:$0xff] }
   0x7   :  { %238 = vmatpush.msk.msra.mxu0 %vm40_vm0, %v275_v10  ;;  %250 = vmatpush.msk.msra.mxu1 %vm57_vm1, %v275_v10  ;;  %vm38_vm4 = vcmp.eq.s32.totalorder %v33_v9, %v36_v3  ;;  %vm55_vm5 = vcmp.eq.s32.totalorder %v35_v5, %v51_v4  ;;  %vm54_vm7 = vcmp.eq.s32.totalorder %v34_v7, %v51_v4  ;;  %v30_v25 = vld [vmem:[%s372_s2 + $0x38] sm:$0xff] }
   0x8   :  { %268 = vmatpush.msk.msra.mxu2 %vm57_vm1, %v275_v10  ;;  %264 = vmatpush.msk.msra.mxu3 %vm40_vm0, %v275_v10  ;;  %vm53_vm9 = vcmp.eq.s32.totalorder %v33_v9, %v51_v4 }
   0x9   :  { %239 = vmatpush.msk.msra.mxu0 %vm39_vm2, %v275_v10  ;;  %251 = vmatpush.msk.msra.mxu1 %vm56_vm3, %v275_v10 }
   0xa   :  { %269 = vmatpush.msk.msra.mxu2 %vm56_vm3, %v275_v10  ;;  %265 = vmatpush.msk.msra.mxu3 %vm39_vm2, %v275_v10 }
   0xb   :  { %240 = vmatpush.msk.msra.mxu0 %vm38_vm4, %v275_v10  ;;  %252 = vmatpush.msk.msra.mxu1 %vm55_vm5, %v275_v10 }
   0xc   :  { %270 = vmatpush.msk.msra.mxu2 %vm55_vm5, %v275_v10  ;;  %266 = vmatpush.msk.msra.mxu3 %vm38_vm4, %v275_v10 }
   0xd   :  { %241 = vmatpush.msk.msra.mxu0 %vm37_vm6, %v275_v10  ;;  %253 = vmatpush.msk.msra.mxu1 %vm54_vm7, %v275_v10 }
   0xe   :  { %242 = vmatmul.msk.f32.vlgmr.msra.gmra.mxu0 %vm70_vm8, %v15_v11  ;;  %271 = vmatpush.msk.msra.mxu2 %vm54_vm7, %v275_v10 }
   0xf   :  { %254 = vmatpush.msk.msra.mxu1 %vm53_vm9, %v275_v10  ;;  %267 = vmatpush.msk.msra.mxu3 %vm37_vm6, %v275_v10 }
  0x10   :  { %272 = vmatpush.msk.msra.mxu2 %vm53_vm9, %v275_v10  ;;  %247 = vmatmul.msk.f32.vlgmr.msra.gmra.mxu3 %vm70_vm8, %v20_v12 }
  0x11   :  { %255 = vmatpush.msk.msra.mxu1 %vm52_vm10, %v275_v10 }
  0x12   :  { %256 = vmatmul.msk.f32.vlgmr.msra.gmra.mxu1 %vm136_vm11, %v23_v13  ;;  %273 = vmatpush.msk.msra.mxu2 %vm52_vm10, %v275_v10 }
  0x13   :  { %260 = vmatmul.msk.f32.vlgmr.msra.gmra.mxu2 %vm136_vm11, %v27_v14 }
  0x16   :  { %243 = vmatmul.msk.f32.gmra.mxu0 %vm70_vm8, %v16_v15 }
  0x18   :  { %248 = vmatmul.msk.f32.gmra.mxu3 %vm70_vm8, %v21_v16 }
  0x1a   :  { %257 = vmatmul.msk.f32.gmra.mxu1 %vm136_vm11, %v24_v17 }
  0x1b   :  { %261 = vmatmul.msk.f32.gmra.mxu2 %vm136_vm11, %v28_v18 }
  0x1e   :  { %244 = vmatmul.msk.f32.gmra.mxu0 %vm70_vm8, %v17_v19 }
  0x20   :  { %249 = vmatmul.msk.f32.gmra.mxu3 %vm70_vm8, %v22_v20 }
  0x22   :  { %258 = vmatmul.msk.f32.gmra.mxu1 %vm136_vm11, %v25_v21 }
  0x23   :  { %262 = vmatmul.msk.f32.gmra.mxu2 %vm136_vm11, %v29_v22 }
  0x26   :  { %245 = vmatmul.msk.f32.gmra.mxu0 %vm70_vm8, %v18_v23 }
  0x2a   :  { %259 = vmatmul.msk.f32.gmra.mxu1 %vm136_vm11, %v26_v24 }
  0x2b   :  { %263 = vmatmul.msk.f32.gmra.mxu2 %vm136_vm11, %v30_v25 }
  0x2e   :  { %246 = vmatmul.msk.f32.gmra.mxu0 %vm70_vm8, %v19_v26 }
  0x8b   :  { %v112_v27 = vpop.f32.mrf.mxu0 }
  0x8f   :  { %v178_v28 = vpop.f32.mrf.mxu1 }
  0x90   :  { %v202_v39 = vmul.f32 %v178_v28, %v112_v27 }
  0x93   :  { %v115_v29 = vpop.f32.mrf.mxu0  ;;  %v127_v32 = vpop.f32.mrf.mxu3 }
  0x96   :  { %v190_v30 = vpop.f32.mrf.mxu2 }
  0x97   :  { %v181_v31 = vpop.f32.mrf.mxu1 }
  0x98   :  { %v203_v38 = vmul.f32 %v181_v31, %v115_v29 }
  0x9a   :  { %v210_v43 = vadd.f32 %v203_v38, %v202_v39 }
  0x9b   :  { %v118_v33 = vpop.f32.mrf.mxu0  ;;  %v130_v37 = vpop.f32.mrf.mxu3 }
  0x9e   :  { %v193_v34 = vpop.f32.mrf.mxu2 }
  0x9f   :  { %v184_v35 = vpop.f32.mrf.mxu1  ;;  %v207_v50 = vmul.f32 %v193_v34, %v127_v32 }
  0xa0   :  { %v204_v40 = vmul.f32 %v184_v35, %v118_v33 }
  0xa2   :  { %v211_v45 = vadd.f32 %v210_v43, %v204_v40 }
  0xa3   :  { %v121_v36 = vpop.f32.mrf.mxu0  ;;  %v133_v49 = vpop.f32.mrf.mxu3 }
  0xa6   :  { %v196_v41 = vpop.f32.mrf.mxu2 }
  0xa7   :  { %v187_v42 = vpop.f32.mrf.mxu1  ;;  %v208_v53 = vmul.f32 %v196_v41, %v130_v37 }
  0xa8   :  { %v205_v44 = vmul.f32 %v187_v42, %v121_v36 }
  0xaa   :  { %v212_v47 = vadd.f32 %v211_v45, %v205_v44 }
  0xab   :  { %v124_v46 = vpop.f32.mrf.mxu0 }
  0xac   :  { %v206_v48 = vmul.f32 %v190_v30, %v124_v46 }
  0xae   :  { %v213_v51 = vadd.f32 %v212_v47, %v206_v48  ;;  %v199_v52 = vpop.f32.mrf.mxu2 }
  0xaf   :  { %v209_v55 = vmul.f32 %v199_v52, %v133_v49 }
  0xb0   :  { %v214_v54 = vadd.f32 %v213_v51, %v207_v50 }
  0xb2   :  { %v215_v56 = vadd.f32 %v214_v54, %v208_v53 }
  0xb4   :  { %v216_v57 = vadd.f32 %v215_v56, %v209_v55 }
  0xb6   :  { %v217_v58 = vrot.slane %v216_v57, 4 }
  0xb8   :  { %v218_v59 = vadd.f32 %v217_v58, %v216_v57 }
  0xba   :  { %v219_v60 = vrot.slane %v218_v59, 2 }
  0xbc   :  { %v220_v61 = vadd.f32 %v219_v60, %v218_v59 }
  0xbe   :  { %v221_v62 = vrot.slane %v220_v61, 1 }
  0xc0   :  { %v222_v63 = vadd.f32 %v221_v62, %v220_v61 }
  0xc2   :  { %223 = vst [vmem:[%s373_s3] sm:$0x1] %v222_v63 }

</bundles_post_ra>
